<compile_context>
chip_gen: v6e
topology: v6e:2x2x1
jax: 0.10.0
libtpu: 0.0.40
codegen_flags: <defaults>
</compile_context>

<pallas_src>
import math

import jax
import jax.numpy as jnp
from jax.experimental import pallas as pl
from jax.experimental.pallas import tpu as pltpu

IN_F = 2
HID_F = 6
OUT_F = 3
LANES = 128

# Packed-parameter layout (flat f32 vector, resident in SMEM).
W1_OFF = 0                       # w1[j, k] at W1_OFF + j*IN_F + k   (torch lin1.weight)
B1_OFF = W1_OFF + HID_F * IN_F   # b1[j]    at B1_OFF + j
W2_OFF = B1_OFF + HID_F          # w2[i, j] at W2_OFF + i*HID_F + j  (torch oupt.weight)
B2_OFF = W2_OFF + OUT_F * HID_F  # b2[i]    at B2_OFF + i
N_PARAMS = B2_OFF + OUT_F        # 39 scalars total


def _cdiv(a, b):
    return -(-a // b)


def _round_up(x, m):
    return _cdiv(x, m) * m


def _pick_tile(s_raw, ts_max=1024):
    """Sublane tile size for `s_raw` needed sublanes (each = 128 batch lanes)."""
    if s_raw <= 16:
        return max(s_raw, 1)                       # one full-extent tile
    # >=2 tiles so both v7x TensorCores get work; each tile a multiple of 8
    # sublanes; capped at 1024 sublanes (=128K lanes, ~5 MiB double-buffered
    # in+out per step -> fits every generation's VMEM with headroom).
    n_tiles = max(2, _cdiv(s_raw, ts_max))
    return min(ts_max, _round_up(_cdiv(s_raw, n_tiles), 8))


def mlp_kernel(params_ref, x_ref, o_ref):
    """One batch tile, batch dense over sublanes AND lanes.

    x_ref: (IN_F, TS, 128), o_ref: (OUT_F, TS, 128), params_ref: (39,) in SMEM.
    All weights/biases are scalars broadcast against dense (TS, 128) slabs on
    the VPU; the MXU is deliberately left idle (K=2 / K=6 contractions).
    """
    x0 = x_ref[0]                                   # (TS, 128) dense slab
    x1 = x_ref[1]

    # Interleaved hidden/output accumulation: h_j is consumed immediately, so
    # only x0, x1 and the 3 output accumulators stay live.
    acc = [None] * OUT_F
    for j in range(HID_F):
        z = (x0 * params_ref[W1_OFF + j * IN_F + 0]
             + x1 * params_ref[W1_OFF + j * IN_F + 1]
             + params_ref[B1_OFF + j])
        h = jnp.tanh(z)                             # tanh(lin1(x))
        h = jnp.tanh(jnp.maximum(h, 0.0))           # tanh(relu(.))
        for i in range(OUT_F):
            t = h * params_ref[W2_OFF + i * HID_F + j]
            acc[i] = t if acc[i] is None else acc[i] + t

    for i in range(OUT_F):
        o_ref[i] = acc[i] + params_ref[B2_OFF + i]  # dense, unmasked store


def neural_net_forward_packed(x_packed, params, *, ts=None, ts_max=1024):
    """Packed-layout entry point (no wrapper layout passes).

    x_packed: (IN_F, S, 128) f32  ->  (OUT_F, S, 128) f32.
    """
    _, S, L = x_packed.shape
    assert L == LANES
    if ts is None:
        ts = _pick_tile(S, ts_max)
        if S % ts != 0:
            ts = S                                  # fall back to one tile
    grid = (S // ts,)

    n = S * LANES
    cost = pl.CostEstimate(
        flops=2 * n * (IN_F * HID_F + HID_F * OUT_F),
        transcendentals=2 * n * HID_F,
        bytes_accessed=4 * n * (IN_F + OUT_F) + 4 * N_PARAMS,
    )

    return pl.pallas_call(
        mlp_kernel,
        out_shape=jax.ShapeDtypeStruct((OUT_F, S, LANES), jnp.float32),
        grid_spec=pltpu.PrefetchScalarGridSpec(
            num_scalar_prefetch=0,
            grid=grid,
            in_specs=[
                # Packed weights/biases: one tiny slab, resident in SMEM.
                pl.BlockSpec(memory_space=pltpu.MemorySpace.SMEM),
                # Batch tile: (IN_F, TS, 128), dense, double-buffered.
                pl.BlockSpec((IN_F, ts, LANES), lambda i: (0, i, 0)),
            ],
            out_specs=pl.BlockSpec((OUT_F, ts, LANES), lambda i: (0, i, 0)),
        ),
        compiler_params=pltpu.CompilerParams(
            dimension_semantics=("parallel",)),     # shard tiles across TCs
        cost_estimate=cost,
    )(params, x_packed)


def neural_net_forward(x, params, *, ts_max=1024):
    """Convenience wrapper: x (B, 2) f32, params (39,) f32 -> (B, 3) f32.

    The transpose/pad/reshape each way are single fused XLA copies; callers
    that can produce the (features, S, 128) layout upstream should use
    neural_net_forward_packed directly and skip them.
    """
    B = x.shape[0]
    s_raw = max(1, _cdiv(B, LANES))
    ts = _pick_tile(s_raw, ts_max)
    s_pad = _round_up(s_raw, ts)
    b_pad = s_pad * LANES

    xt = x.T                                        # (IN_F, B)
    if b_pad != B:
        xt = jnp.pad(xt, ((0, 0), (0, b_pad - B)))
    x_packed = xt.reshape(IN_F, s_pad, LANES)

    out_packed = neural_net_forward_packed(x_packed, params, ts=ts)
    return out_packed.reshape(OUT_F, b_pad)[:, :B].T


def init_params(key):
    """Matches the PyTorch init: xavier_uniform_ weights, zero biases."""
    k1, k2 = jax.random.split(key)
    bound1 = math.sqrt(6.0 / (IN_F + HID_F))
    w1 = jax.random.uniform(k1, (HID_F, IN_F), jnp.float32, -bound1, bound1)
    bound2 = math.sqrt(6.0 / (HID_F + OUT_F))
    w2 = jax.random.uniform(k2, (OUT_F, HID_F), jnp.float32, -bound2, bound2)
    b1 = jnp.zeros((HID_F,), jnp.float32)
    b2 = jnp.zeros((OUT_F,), jnp.float32)
    return w1, b1, w2, b2


def pack_params(w1, b1, w2, b2):
    return jnp.concatenate(
        [w1.reshape(-1), b1, w2.reshape(-1), b2]).astype(jnp.float32)


def reference_forward(x, w1, b1, w2, b2):
    h = jnp.tanh(x @ w1.T + b1)
    h = jnp.tanh(jnp.maximum(h, 0.0))
    return h @ w2.T + b2


if __name__ == "__main__":
    key = jax.random.PRNGKey(0)
    k_param, k_x1, k_x2 = jax.random.split(key, 3)
    w1, b1, w2, b2 = init_params(k_param)
    params = pack_params(w1, b1, w2, b2)
    assert params.shape == (N_PARAMS,)

    # Small case: single full-extent tile, grid=(1,).
    x_small = jax.random.normal(k_x1, (8, IN_F), jnp.float32)
    out_small = jax.block_until_ready(neural_net_forward(x_small, params))
    ref_small = reference_forward(x_small, w1, b1, w2, b2)
    assert out_small.shape == (8, OUT_F)
    assert jnp.allclose(out_small, ref_small, atol=1e-5, rtol=1e-5)

    # Larger, non-divisible batch exercising the padded multi-tile
    # (megacore-parallel) path.
    x_big = jax.random.normal(k_x2, (2200, IN_F), jnp.float32)
    out_big = jax.block_until_ready(neural_net_forward(x_big, params))
    ref_big = reference_forward(x_big, w1, b1, w2, b2)
    assert out_big.shape == (2200, OUT_F)
    assert jnp.allclose(out_big, ref_big, atol=1e-5, rtol=1e-5)

    print("KERNEL_OK")
</pallas_src>

<mosaic_0001>
module attributes {stable_mosaic.version = 11 : i64} {
  func.func @mlp_kernel(%arg0: i32, %arg1: memref<39xf32, #tpu.memory_space<smem>>, %arg2: memref<2x1x128xf32, #tpu.memory_space<vmem>>, %arg3: memref<3x1x128xf32, #tpu.memory_space<vmem>>) attributes {dimension_semantics = [#tpu.dimension_semantics<parallel>], iteration_bounds = array<i64: 1>, scalar_prefetch = 0 : i64, scratch_operands = 0 : i64, tpu.core_type = #tpu.core_type<tc>, window_params = [{transform_indices = @transform_0, window_bounds = array<i64: 39>}, {transform_indices = @transform_1, window_bounds = array<i64: 2, 1, 128>}, {transform_indices = @transform_2, window_bounds = array<i64: 3, 1, 128>}]} {
    %c0 = arith.constant 0 : index
    %c0_0 = arith.constant 0 : index
    %c0_1 = arith.constant 0 : index
    %0 = vector.load %arg2[%c0, %c0_0, %c0_1] : memref<2x1x128xf32, #tpu.memory_space<vmem>>, vector<1x1x128xf32>
    %1 = vector.shape_cast %0 : vector<1x1x128xf32> to vector<1x128xf32>
    %c1 = arith.constant 1 : index
    %c0_2 = arith.constant 0 : index
    %c0_3 = arith.constant 0 : index
    %2 = vector.load %arg2[%c1, %c0_2, %c0_3] : memref<2x1x128xf32, #tpu.memory_space<vmem>>, vector<1x1x128xf32>
    %3 = vector.shape_cast %2 : vector<1x1x128xf32> to vector<1x128xf32>
    %c0_4 = arith.constant 0 : index
    %4 = memref.load %arg1[%c0_4] : memref<39xf32, #tpu.memory_space<smem>>
    %5 = vector.broadcast %4 : f32 to vector<1x128xf32>
    %6 = arith.mulf %1, %5 : vector<1x128xf32>
    %c1_5 = arith.constant 1 : index
    %7 = memref.load %arg1[%c1_5] : memref<39xf32, #tpu.memory_space<smem>>
    %8 = vector.broadcast %7 : f32 to vector<1x128xf32>
    %9 = arith.mulf %3, %8 : vector<1x128xf32>
    %10 = arith.addf %6, %9 : vector<1x128xf32>
    %c12 = arith.constant 12 : index
    %11 = memref.load %arg1[%c12] : memref<39xf32, #tpu.memory_space<smem>>
    %12 = vector.broadcast %11 : f32 to vector<1x128xf32>
    %13 = arith.addf %10, %12 : vector<1x128xf32>
    %14 = math.tanh %13 : vector<1x128xf32>
    %cst = arith.constant 0.000000e+00 : f32
    %15 = vector.broadcast %cst : f32 to vector<1x128xf32>
    %16 = arith.maximumf %14, %15 : vector<1x128xf32>
    %17 = math.tanh %16 : vector<1x128xf32>
    %c18 = arith.constant 18 : index
    %18 = memref.load %arg1[%c18] : memref<39xf32, #tpu.memory_space<smem>>
    %19 = vector.broadcast %18 : f32 to vector<1x128xf32>
    %20 = arith.mulf %17, %19 : vector<1x128xf32>
    %c24 = arith.constant 24 : index
    %21 = memref.load %arg1[%c24] : memref<39xf32, #tpu.memory_space<smem>>
    %22 = vector.broadcast %21 : f32 to vector<1x128xf32>
    %23 = arith.mulf %17, %22 : vector<1x128xf32>
    %c30 = arith.constant 30 : index
    %24 = memref.load %arg1[%c30] : memref<39xf32, #tpu.memory_space<smem>>
    %25 = vector.broadcast %24 : f32 to vector<1x128xf32>
    %26 = arith.mulf %17, %25 : vector<1x128xf32>
    %c2 = arith.constant 2 : index
    %27 = memref.load %arg1[%c2] : memref<39xf32, #tpu.memory_space<smem>>
    %28 = vector.broadcast %27 : f32 to vector<1x128xf32>
    %29 = arith.mulf %1, %28 : vector<1x128xf32>
    %c3 = arith.constant 3 : index
    %30 = memref.load %arg1[%c3] : memref<39xf32, #tpu.memory_space<smem>>
    %31 = vector.broadcast %30 : f32 to vector<1x128xf32>
    %32 = arith.mulf %3, %31 : vector<1x128xf32>
    %33 = arith.addf %29, %32 : vector<1x128xf32>
    %c13 = arith.constant 13 : index
    %34 = memref.load %arg1[%c13] : memref<39xf32, #tpu.memory_space<smem>>
    %35 = vector.broadcast %34 : f32 to vector<1x128xf32>
    %36 = arith.addf %33, %35 : vector<1x128xf32>
    %37 = math.tanh %36 : vector<1x128xf32>
    %cst_6 = arith.constant 0.000000e+00 : f32
    %38 = vector.broadcast %cst_6 : f32 to vector<1x128xf32>
    %39 = arith.maximumf %37, %38 : vector<1x128xf32>
    %40 = math.tanh %39 : vector<1x128xf32>
    %c19 = arith.constant 19 : index
    %41 = memref.load %arg1[%c19] : memref<39xf32, #tpu.memory_space<smem>>
    %42 = vector.broadcast %41 : f32 to vector<1x128xf32>
    %43 = arith.mulf %40, %42 : vector<1x128xf32>
    %44 = arith.addf %20, %43 : vector<1x128xf32>
    %c25 = arith.constant 25 : index
    %45 = memref.load %arg1[%c25] : memref<39xf32, #tpu.memory_space<smem>>
    %46 = vector.broadcast %45 : f32 to vector<1x128xf32>
    %47 = arith.mulf %40, %46 : vector<1x128xf32>
    %48 = arith.addf %23, %47 : vector<1x128xf32>
    %c31 = arith.constant 31 : index
    %49 = memref.load %arg1[%c31] : memref<39xf32, #tpu.memory_space<smem>>
    %50 = vector.broadcast %49 : f32 to vector<1x128xf32>
    %51 = arith.mulf %40, %50 : vector<1x128xf32>
    %52 = arith.addf %26, %51 : vector<1x128xf32>
    %c4 = arith.constant 4 : index
    %53 = memref.load %arg1[%c4] : memref<39xf32, #tpu.memory_space<smem>>
    %54 = vector.broadcast %53 : f32 to vector<1x128xf32>
    %55 = arith.mulf %1, %54 : vector<1x128xf32>
    %c5 = arith.constant 5 : index
    %56 = memref.load %arg1[%c5] : memref<39xf32, #tpu.memory_space<smem>>
    %57 = vector.broadcast %56 : f32 to vector<1x128xf32>
    %58 = arith.mulf %3, %57 : vector<1x128xf32>
    %59 = arith.addf %55, %58 : vector<1x128xf32>
    %c14 = arith.constant 14 : index
    %60 = memref.load %arg1[%c14] : memref<39xf32, #tpu.memory_space<smem>>
    %61 = vector.broadcast %60 : f32 to vector<1x128xf32>
    %62 = arith.addf %59, %61 : vector<1x128xf32>
    %63 = math.tanh %62 : vector<1x128xf32>
    %cst_7 = arith.constant 0.000000e+00 : f32
    %64 = vector.broadcast %cst_7 : f32 to vector<1x128xf32>
    %65 = arith.maximumf %63, %64 : vector<1x128xf32>
    %66 = math.tanh %65 : vector<1x128xf32>
    %c20 = arith.constant 20 : index
    %67 = memref.load %arg1[%c20] : memref<39xf32, #tpu.memory_space<smem>>
    %68 = vector.broadcast %67 : f32 to vector<1x128xf32>
    %69 = arith.mulf %66, %68 : vector<1x128xf32>
    %70 = arith.addf %44, %69 : vector<1x128xf32>
    %c26 = arith.constant 26 : index
    %71 = memref.load %arg1[%c26] : memref<39xf32, #tpu.memory_space<smem>>
    %72 = vector.broadcast %71 : f32 to vector<1x128xf32>
    %73 = arith.mulf %66, %72 : vector<1x128xf32>
    %74 = arith.addf %48, %73 : vector<1x128xf32>
    %c32 = arith.constant 32 : index
    %75 = memref.load %arg1[%c32] : memref<39xf32, #tpu.memory_space<smem>>
    %76 = vector.broadcast %75 : f32 to vector<1x128xf32>
    %77 = arith.mulf %66, %76 : vector<1x128xf32>
    %78 = arith.addf %52, %77 : vector<1x128xf32>
    %c6 = arith.constant 6 : index
    %79 = memref.load %arg1[%c6] : memref<39xf32, #tpu.memory_space<smem>>
    %80 = vector.broadcast %79 : f32 to vector<1x128xf32>
    %81 = arith.mulf %1, %80 : vector<1x128xf32>
    %c7 = arith.constant 7 : index
    %82 = memref.load %arg1[%c7] : memref<39xf32, #tpu.memory_space<smem>>
    %83 = vector.broadcast %82 : f32 to vector<1x128xf32>
    %84 = arith.mulf %3, %83 : vector<1x128xf32>
    %85 = arith.addf %81, %84 : vector<1x128xf32>
    %c15 = arith.constant 15 : index
    %86 = memref.load %arg1[%c15] : memref<39xf32, #tpu.memory_space<smem>>
    %87 = vector.broadcast %86 : f32 to vector<1x128xf32>
    %88 = arith.addf %85, %87 : vector<1x128xf32>
    %89 = math.tanh %88 : vector<1x128xf32>
    %cst_8 = arith.constant 0.000000e+00 : f32
    %90 = vector.broadcast %cst_8 : f32 to vector<1x128xf32>
    %91 = arith.maximumf %89, %90 : vector<1x128xf32>
    %92 = math.tanh %91 : vector<1x128xf32>
    %c21 = arith.constant 21 : index
    %93 = memref.load %arg1[%c21] : memref<39xf32, #tpu.memory_space<smem>>
    %94 = vector.broadcast %93 : f32 to vector<1x128xf32>
    %95 = arith.mulf %92, %94 : vector<1x128xf32>
    %96 = arith.addf %70, %95 : vector<1x128xf32>
    %c27 = arith.constant 27 : index
    %97 = memref.load %arg1[%c27] : memref<39xf32, #tpu.memory_space<smem>>
    %98 = vector.broadcast %97 : f32 to vector<1x128xf32>
    %99 = arith.mulf %92, %98 : vector<1x128xf32>
    %100 = arith.addf %74, %99 : vector<1x128xf32>
    %c33 = arith.constant 33 : index
    %101 = memref.load %arg1[%c33] : memref<39xf32, #tpu.memory_space<smem>>
    %102 = vector.broadcast %101 : f32 to vector<1x128xf32>
    %103 = arith.mulf %92, %102 : vector<1x128xf32>
    %104 = arith.addf %78, %103 : vector<1x128xf32>
    %c8 = arith.constant 8 : index
    %105 = memref.load %arg1[%c8] : memref<39xf32, #tpu.memory_space<smem>>
    %106 = vector.broadcast %105 : f32 to vector<1x128xf32>
    %107 = arith.mulf %1, %106 : vector<1x128xf32>
    %c9 = arith.constant 9 : index
    %108 = memref.load %arg1[%c9] : memref<39xf32, #tpu.memory_space<smem>>
    %109 = vector.broadcast %108 : f32 to vector<1x128xf32>
    %110 = arith.mulf %3, %109 : vector<1x128xf32>
    %111 = arith.addf %107, %110 : vector<1x128xf32>
    %c16 = arith.constant 16 : index
    %112 = memref.load %arg1[%c16] : memref<39xf32, #tpu.memory_space<smem>>
    %113 = vector.broadcast %112 : f32 to vector<1x128xf32>
    %114 = arith.addf %111, %113 : vector<1x128xf32>
    %115 = math.tanh %114 : vector<1x128xf32>
    %cst_9 = arith.constant 0.000000e+00 : f32
    %116 = vector.broadcast %cst_9 : f32 to vector<1x128xf32>
    %117 = arith.maximumf %115, %116 : vector<1x128xf32>
    %118 = math.tanh %117 : vector<1x128xf32>
    %c22 = arith.constant 22 : index
    %119 = memref.load %arg1[%c22] : memref<39xf32, #tpu.memory_space<smem>>
    %120 = vector.broadcast %119 : f32 to vector<1x128xf32>
    %121 = arith.mulf %118, %120 : vector<1x128xf32>
    %122 = arith.addf %96, %121 : vector<1x128xf32>
    %c28 = arith.constant 28 : index
    %123 = memref.load %arg1[%c28] : memref<39xf32, #tpu.memory_space<smem>>
    %124 = vector.broadcast %123 : f32 to vector<1x128xf32>
    %125 = arith.mulf %118, %124 : vector<1x128xf32>
    %126 = arith.addf %100, %125 : vector<1x128xf32>
    %c34 = arith.constant 34 : index
    %127 = memref.load %arg1[%c34] : memref<39xf32, #tpu.memory_space<smem>>
    %128 = vector.broadcast %127 : f32 to vector<1x128xf32>
    %129 = arith.mulf %118, %128 : vector<1x128xf32>
    %130 = arith.addf %104, %129 : vector<1x128xf32>
    %c10 = arith.constant 10 : index
    %131 = memref.load %arg1[%c10] : memref<39xf32, #tpu.memory_space<smem>>
    %132 = vector.broadcast %131 : f32 to vector<1x128xf32>
    %133 = arith.mulf %1, %132 : vector<1x128xf32>
    %c11 = arith.constant 11 : index
    %134 = memref.load %arg1[%c11] : memref<39xf32, #tpu.memory_space<smem>>
    %135 = vector.broadcast %134 : f32 to vector<1x128xf32>
    %136 = arith.mulf %3, %135 : vector<1x128xf32>
    %137 = arith.addf %133, %136 : vector<1x128xf32>
    %c17 = arith.constant 17 : index
    %138 = memref.load %arg1[%c17] : memref<39xf32, #tpu.memory_space<smem>>
    %139 = vector.broadcast %138 : f32 to vector<1x128xf32>
    %140 = arith.addf %137, %139 : vector<1x128xf32>
    %141 = math.tanh %140 : vector<1x128xf32>
    %cst_10 = arith.constant 0.000000e+00 : f32
    %142 = vector.broadcast %cst_10 : f32 to vector<1x128xf32>
    %143 = arith.maximumf %141, %142 : vector<1x128xf32>
    %144 = math.tanh %143 : vector<1x128xf32>
    %c23 = arith.constant 23 : index
    %145 = memref.load %arg1[%c23] : memref<39xf32, #tpu.memory_space<smem>>
    %146 = vector.broadcast %145 : f32 to vector<1x128xf32>
    %147 = arith.mulf %144, %146 : vector<1x128xf32>
    %148 = arith.addf %122, %147 : vector<1x128xf32>
    %c29 = arith.constant 29 : index
    %149 = memref.load %arg1[%c29] : memref<39xf32, #tpu.memory_space<smem>>
    %150 = vector.broadcast %149 : f32 to vector<1x128xf32>
    %151 = arith.mulf %144, %150 : vector<1x128xf32>
    %152 = arith.addf %126, %151 : vector<1x128xf32>
    %c35 = arith.constant 35 : index
    %153 = memref.load %arg1[%c35] : memref<39xf32, #tpu.memory_space<smem>>
    %154 = vector.broadcast %153 : f32 to vector<1x128xf32>
    %155 = arith.mulf %144, %154 : vector<1x128xf32>
    %156 = arith.addf %130, %155 : vector<1x128xf32>
    %c36 = arith.constant 36 : index
    %157 = memref.load %arg1[%c36] : memref<39xf32, #tpu.memory_space<smem>>
    %158 = vector.broadcast %157 : f32 to vector<1x128xf32>
    %159 = arith.addf %148, %158 : vector<1x128xf32>
    %c0_11 = arith.constant 0 : index
    %c0_12 = arith.constant 0 : index
    %c0_13 = arith.constant 0 : index
    %160 = vector.load %arg3[%c0_11, %c0_12, %c0_13] : memref<3x1x128xf32, #tpu.memory_space<vmem>>, vector<1x1x128xf32>
    %161 = vector.shape_cast %160 : vector<1x1x128xf32> to vector<1x128xf32>
    %162 = vector.shape_cast %159 : vector<1x128xf32> to vector<1x1x128xf32>
    tpu.vector_store %arg3[%c0_11, %c0_12, %c0_13], %162 {strides = array<i32>} : memref<3x1x128xf32, #tpu.memory_space<vmem>>, vector<1x1x128xf32>,
    %c37 = arith.constant 37 : index
    %163 = memref.load %arg1[%c37] : memref<39xf32, #tpu.memory_space<smem>>
    %164 = vector.broadcast %163 : f32 to vector<1x128xf32>
    %165 = arith.addf %152, %164 : vector<1x128xf32>
    %c1_14 = arith.constant 1 : index
    %c0_15 = arith.constant 0 : index
    %c0_16 = arith.constant 0 : index
    %166 = vector.load %arg3[%c1_14, %c0_15, %c0_16] : memref<3x1x128xf32, #tpu.memory_space<vmem>>, vector<1x1x128xf32>
    %167 = vector.shape_cast %166 : vector<1x1x128xf32> to vector<1x128xf32>
    %168 = vector.shape_cast %165 : vector<1x128xf32> to vector<1x1x128xf32>
    tpu.vector_store %arg3[%c1_14, %c0_15, %c0_16], %168 {strides = array<i32>} : memref<3x1x128xf32, #tpu.memory_space<vmem>>, vector<1x1x128xf32>,
    %c38 = arith.constant 38 : index
    %169 = memref.load %arg1[%c38] : memref<39xf32, #tpu.memory_space<smem>>
    %170 = vector.broadcast %169 : f32 to vector<1x128xf32>
    %171 = arith.addf %156, %170 : vector<1x128xf32>
    %c2_17 = arith.constant 2 : index
    %c0_18 = arith.constant 0 : index
    %c0_19 = arith.constant 0 : index
    %172 = vector.load %arg3[%c2_17, %c0_18, %c0_19] : memref<3x1x128xf32, #tpu.memory_space<vmem>>, vector<1x1x128xf32>
    %173 = vector.shape_cast %172 : vector<1x1x128xf32> to vector<1x128xf32>
    %174 = vector.shape_cast %171 : vector<1x128xf32> to vector<1x1x128xf32>
    tpu.vector_store %arg3[%c2_17, %c0_18, %c0_19], %174 {strides = array<i32>} : memref<3x1x128xf32, #tpu.memory_space<vmem>>, vector<1x1x128xf32>,
    return
  }
  func.func @transform_0(%arg0: i32) -> i32 {
    %c0_i32 = arith.constant 0 : i32
    %c0_i32_0 = arith.constant 0 : i32
    return %c0_i32 : i32
  }
  func.func @transform_1(%arg0: i32) -> (i32, i32, i32) {
    %c0_i32 = arith.constant 0 : i32
    %c0_i32_0 = arith.constant 0 : i32
    %c0_i32_1 = arith.constant 0 : i32
    return %c0_i32, %arg0, %c0_i32_0 : i32, i32, i32
  }
  func.func @transform_2(%arg0: i32) -> (i32, i32, i32) {
    %c0_i32 = arith.constant 0 : i32
    %c0_i32_0 = arith.constant 0 : i32
    %c0_i32_1 = arith.constant 0 : i32
    return %c0_i32, %arg0, %c0_i32_0 : i32, i32, i32
  }
}

</mosaic_0001>

<bundles_post_ra>
// kernel: tpu_custom_call.1
= control target key start
LH: loop header
LB: loop body
LE: loop exit
PB: predicated region body
PF: predicated region fallthrough
CT: control target
= control target key end

     0   :  { %7 = vsyncpa [#allocation5], 0  ;;  %s423_s0 = inlined_call_operand.hbm [shape: f32[39], index: 0, kind: input, shape index: {}]   ;;  %s424_s1 = inlined_call_operand.hbm [shape: f32[2,1,128], index: 1, kind: input, shape index: {}]   ;;  %s425_s2 = inlined_call_operand.hbm [shape: f32[3,1,128], index: 2, kind: output, shape index: {}]  }
   0x1   :  { %8 = vsyncpa [#allocation3], 0 }
   0x2   :  { %9 = vsyncpa [#allocation4], 0  ;;  %s340_s9 = smov [#allocation2]   ;;  %s341_s12 = smov [#allocation6]  }
   0x3   :  { %17 = dma.hbm_to_smem %s423_s0, 16, %s340_s9, [#allocation5]  }
   0x4   :  { %s23_s13 = sshll.u32 %s341_s12, 4  ;;  %s24_s13 = int_to_ptr.vmem [resolvable:$true] %s23_s13 }
   0x5   :  { %s302_s14 = scalar_lea.vmem %s24_s13, 32  ;;  %p307_p1 = scmp.lt.s32.totalorder %s24_s13, %s24_s13 }
   0x6   :  { %p303_p0 = scmp.ne.s32.totalorder %s24_s13, %s302_s14  ;;  %p308_p2 = scmp.lt.s32.totalorder %s302_s14, %s302_s14 }
   0x8   :  { %p309_p3 = por %p308_p2, %p307_p1 }
   0xa   :  { %p310_p4 = pnand %p309_p3, %p303_p0 }
   0xc   :  { %313 = shalt.err (!%p310_p4)
}
   0xd   :  { %s342_s15 = smov 16   ;;  %s343_s16 = smov 1  }
   0xe   :  { %29 = dma.hbm_to_vmem [thread:$0]  %s424_s1, 32, %s24_s13, [#allocation3], %s342_s15, %s342_s15, %s343_s16  }
   0xf   :  { %334 = dma.done.wait [#allocation5], 16  }
  0x10   :  { %335 = vsyncadd [#allocation5], 4294967280 }
  0x11   :  { %336 = dma.done.wait [#allocation3], 32  }
  0x12   :  { %337 = vsyncadd [#allocation3], 4294967264 }
  0x13   :  { %36 = sfence }
  0x14   :  { %s40_s0 = sld [smem:[#allocation2]]  ;;  %v37_v0 = vld [vmem:[#allocation6] sm:$0x1]  ;;  %v39_v1 = vld [vmem:[#allocation6 + $0x1] sm:$0x1] }
  0x15   :  { %s219_s19 = sld [smem:[#allocation2 + $0x1]] }
  0x16   :  { %s220_s20 = sld [smem:[#allocation2 + $0xc]] }
  0x17   :  { %s224_s21 = sld [smem:[#allocation2 + $0x2]] }
  0x18   :  { %s225_s22 = sld [smem:[#allocation2 + $0x3]] }
  0x19   :  { %s226_s23 = sld [smem:[#allocation2 + $0xd]] }
  0x1a   :  { %v41_v2 = vstv %s40_s0  ;;  %s230_s24 = sld [smem:[#allocation2 + $0x4]] }
  0x1b   :  { %v42_v3 = vmul.f32 %v41_v2, %v37_v0  ;;  %v44_v4 = vstv %s219_s19  ;;  %s231_s1 = sld [smem:[#allocation2 + $0x5]] }
  0x1c   :  { %v45_v5 = vmul.f32 %v44_v4, %v39_v1  ;;  %v48_v6 = vstv %s220_s20  ;;  %s232_s25 = sld [smem:[#allocation2 + $0xe]] }
  0x1d   :  { %v63_v8 = vstv %s224_s21  ;;  %s236_s26 = sld [smem:[#allocation2 + $0x6]] }
  0x1e   :  { %v46_v7 = vadd.f32 %v45_v5, %v42_v3  ;;  %v64_v9 = vmul.f32 %v63_v8, %v37_v0  ;;  %v66_v10 = vstv %s225_s22  ;;  %s237_s27 = sld [smem:[#allocation2 + $0x7]] }
  0x1f   :  { %v67_v12 = vmul.f32 %v66_v10, %v39_v1  ;;  %v70_v13 = vstv %s226_s23  ;;  %s238_s28 = sld [smem:[#allocation2 + $0xf]] }
  0x20   :  { %v49_v11 = vadd.f32 %v48_v6, %v46_v7  ;;  %v88_v15 = vstv %s230_s24  ;;  %s242_s29 = sld [smem:[#allocation2 + $0x8]] }
  0x21   :  { %v68_v14 = vadd.f32 %v67_v12, %v64_v9  ;;  %v89_v16 = vmul.f32 %v88_v15, %v37_v0  ;;  %v91_v17 = vstv %s231_s1  ;;  %s243_s30 = sld [smem:[#allocation2 + $0x9]] }
  0x22   :  { %262 = vtanh.f32 %v49_v11  ;;  %v92_v19 = vmul.f32 %v91_v17, %v39_v1  ;;  %v95_v20 = vstv %s232_s25  ;;  %s244_s3 = sld [smem:[#allocation2 + $0x10]] }
  0x23   :  { %v71_v18 = vadd.f32 %v70_v13, %v68_v14  ;;  %v113_v22 = vstv %s236_s26  ;;  %s248_s4 = sld [smem:[#allocation2 + $0xa]] }
  0x24   :  { %v93_v21 = vadd.f32 %v92_v19, %v89_v16  ;;  %v114_v23 = vmul.f32 %v113_v22, %v37_v0  ;;  %v116_v24 = vstv %s237_s27  ;;  %s249_s5 = sld [smem:[#allocation2 + $0xb]] }
  0x25   :  { %264 = vtanh.f32 %v71_v18  ;;  %v117_v26 = vmul.f32 %v116_v24, %v39_v1  ;;  %v120_v27 = vstv %s238_s28  ;;  %s250_s6 = sld [smem:[#allocation2 + $0x11]]  ;;  %s344_s28 = smov [#allocation7]  }
  0x26   :  { %v96_v25 = vadd.f32 %v95_v20, %v93_v21  ;;  %v138_v29 = vstv %s242_s29  ;;  %s369_s7 = sld [smem:[#allocation2 + $0x12]]  ;;  %s206_s29 = sshll.u32 %s344_s28, 4  ;;  %s207_s29 = int_to_ptr.vmem [resolvable:$true] %s206_s29 }
  0x27   :  { %v118_v28 = vadd.f32 %v117_v26, %v114_v23  ;;  %v139_v30 = vmul.f32 %v138_v29, %v37_v0  ;;  %v141_v31 = vstv %s243_s30  ;;  %s371_s8 = sld [smem:[#allocation2 + $0x13]]  ;;  %s314_s30 = scalar_lea.vmem %s207_s29, 48 }
  0x28   :  { %266 = vtanh.f32 %v96_v25  ;;  %v142_v33 = vmul.f32 %v141_v31, %v39_v1  ;;  %v145_v34 = vstv %s244_s3  ;;  %s222_s9 = sld [smem:[#allocation2 + $0x18]]  ;;  %p315_p5 = scmp.ne.s32.totalorder %s207_s29, %s314_s30 }
  0x29   :  { %v121_v32 = vadd.f32 %v120_v27, %v118_v28  ;;  %v163_v36 = vstv %s248_s4  ;;  %s373_s10 = sld [smem:[#allocation2 + $0x19]]  ;;  %s318_s3 = scalar_lea.vmem %s207_s29, 64 }
  0x2a   :  { %v143_v35 = vadd.f32 %v142_v33, %v139_v30  ;;  %v164_v38 = vmul.f32 %v163_v36, %v37_v0  ;;  %v166_v39 = vstv %s249_s5  ;;  %s223_s11 = sld [smem:[#allocation2 + $0x1e]]  ;;  %p319_p6 = scmp.lt.s32.totalorder %s207_s29, %s207_s29 }
  0x2b   :  { %268 = vtanh.f32 %v121_v32  ;;  %v167_v42 = vmul.f32 %v166_v39, %v39_v1  ;;  %v170_v43 = vstv %s250_s6  ;;  %s229_s12 = sld [smem:[#allocation2 + $0x1f]]  ;;  %p320_p7 = scmp.lt.s32.totalorder %s318_s3, %s314_s30 }
  0x2c   :  { %v146_v41 = vadd.f32 %v145_v34, %v143_v35  ;;  %s375_s13 = sld [smem:[#allocation2 + $0x14]]  ;;  %v54_v54 = vstv %s369_s7 }
  0x2d   :  { %v168_v44 = vadd.f32 %v167_v42, %v164_v38  ;;  %s377_s14 = sld [smem:[#allocation2 + $0x1a]]  ;;  %v76_v57 = vstv %s371_s8  ;;  %p321_p8 = por %p320_p7, %p319_p6 }
  0x2e   :  { %s379_s17 = sld [smem:[#allocation2 + $0x20]]  ;;  %v57_v55 = vstv %s222_s9 }
  0x2f   :  { %v263_v37 = vpop.eup %262  ;;  %v171_v47 = vadd.f32 %v170_v43, %v168_v44  ;;  %s381_s18 = sld [smem:[#allocation2 + $0x15]]  ;;  %v80_v59 = vstv %s373_s10  ;;  %p322_p9 = pnand %p321_p8, %p315_p5 }
  0x30   :  { %v51_v40 = vmax.f32 %v263_v37, 0.0  ;;  %s384_s0 = sld [smem:[#allocation2 + $0x1b]]  ;;  %v60_v56 = vstv %s223_s11 }
  0x31   :  { %v84_v60 = vstv %s229_s12  ;;  %s388_s19 = sld [smem:[#allocation2 + $0x21]] }
  0x32   :  { %270 = vtanh.f32 %v51_v40  ;;  %v265_v45 = vpop.eup %264  ;;  %s390_s20 = sld [smem:[#allocation2 + $0x16]]  ;;  %v101_v5 = vstv %s375_s13 }
  0x33   :  { %272 = vtanh.f32 %v146_v41  ;;  %v73_v46 = vmax.f32 %v265_v45, 0.0  ;;  %v105_v7 = vstv %s377_s14  ;;  %s394_s21 = sld [smem:[#allocation2 + $0x1c]] }
  0x34   :  { %v109_v8 = vstv %s379_s17  ;;  %s397_s22 = sld [smem:[#allocation2 + $0x22]] }
  0x35   :  { %274 = vtanh.f32 %v73_v46  ;;  %v267_v48 = vpop.eup %266  ;;  %s399_s23 = sld [smem:[#allocation2 + $0x17]]  ;;  %v126_v16 = vstv %s381_s18 }
  0x36   :  { %276 = vtanh.f32 %v171_v47  ;;  %v98_v49 = vmax.f32 %v267_v48, 0.0  ;;  %v130_v17 = vstv %s384_s0  ;;  %s403_s24 = sld [smem:[#allocation2 + $0x1d]] }
  0x37   :  { %v134_v18 = vstv %s388_s19  ;;  %s253_s1 = sld [smem:[#allocation2 + $0x23]] }
  0x38   :  { %278 = vtanh.f32 %v98_v49  ;;  %v269_v50 = vpop.eup %268  ;;  %s406_s25 = sld [smem:[#allocation2 + $0x24]]  ;;  %v151_v26 = vstv %s390_s20 }
  0x39   :  { %v123_v51 = vmax.f32 %v269_v50, 0.0  ;;  %s408_s26 = sld [smem:[#allocation2 + $0x25]]  ;;  %v155_v27 = vstv %s394_s21 }
  0x3a   :  { %v159_v28 = vstv %s397_s22  ;;  %s256_s27 = sld [smem:[#allocation2 + $0x26]] }
  0x3b   :  { %280 = vtanh.f32 %v123_v51  ;;  %v176_v36 = vstv %s399_s23 }
  0x3c   :  { %v180_v37 = vstv %s403_s24 }
  0x3d   :  { %v184_v38 = vstv %s253_s1 }
  0x3e   :  { %v188_v46 = vstv %s406_s25 }
  0x3f   :  { %v271_v52 = vpop.eup %270  ;;  %v192_v47 = vstv %s408_s26 }
  0x40   :  { %v273_v53 = vpop.eup %272  ;;  %v55_v62 = vmul.f32 %v271_v52, %v54_v54  ;;  %v58_v63 = vmul.f32 %v271_v52, %v57_v55  ;;  %v61_v0 = vmul.f32 %v271_v52, %v60_v56  ;;  %v197_v48 = vstv %s256_s27 }
  0x41   :  { %v148_v58 = vmax.f32 %v273_v53, 0.0 }
  0x42   :  { %v275_v61 = vpop.eup %274 }
  0x43   :  { %282 = vtanh.f32 %v148_v58  ;;  %v277_v1 = vpop.eup %276  ;;  %v77_v2 = vmul.f32 %v275_v61, %v76_v57  ;;  %v81_v3 = vmul.f32 %v275_v61, %v80_v59  ;;  %v85_v4 = vmul.f32 %v275_v61, %v84_v60 }
  0x44   :  { %v173_v6 = vmax.f32 %v277_v1, 0.0 }
  0x45   :  { %v279_v9 = vpop.eup %278  ;;  %v78_v10 = vadd.f32 %v77_v2, %v55_v62  ;;  %v82_v11 = vadd.f32 %v81_v3, %v58_v63  ;;  %v86_v12 = vadd.f32 %v85_v4, %v61_v0 }
  0x46   :  { %284 = vtanh.f32 %v173_v6  ;;  %v102_v13 = vmul.f32 %v279_v9, %v101_v5  ;;  %v106_v14 = vmul.f32 %v279_v9, %v105_v7  ;;  %v110_v15 = vmul.f32 %v279_v9, %v109_v8 }
  0x48   :  { %v281_v19 = vpop.eup %280  ;;  %v103_v20 = vadd.f32 %v102_v13, %v78_v10  ;;  %v107_v21 = vadd.f32 %v106_v14, %v82_v11  ;;  %v111_v22 = vadd.f32 %v110_v15, %v86_v12 }
  0x49   :  { %v127_v23 = vmul.f32 %v281_v19, %v126_v16  ;;  %v131_v24 = vmul.f32 %v281_v19, %v130_v17  ;;  %v135_v25 = vmul.f32 %v281_v19, %v134_v18 }
  0x4b   :  { %v128_v29 = vadd.f32 %v127_v23, %v103_v20  ;;  %v132_v30 = vadd.f32 %v131_v24, %v107_v21  ;;  %v136_v31 = vadd.f32 %v135_v25, %v111_v22 }
  0x50   :  { %v283_v32 = vpop.eup %282 }
  0x51   :  { %v152_v33 = vmul.f32 %v283_v32, %v151_v26  ;;  %v156_v34 = vmul.f32 %v283_v32, %v155_v27  ;;  %v160_v35 = vmul.f32 %v283_v32, %v159_v28 }
  0x53   :  { %v153_v39 = vadd.f32 %v152_v33, %v128_v29  ;;  %v157_v40 = vadd.f32 %v156_v34, %v132_v30  ;;  %v161_v41 = vadd.f32 %v160_v35, %v136_v31  ;;  %v285_v42 = vpop.eup %284 }
  0x54   :  { %v177_v43 = vmul.f32 %v285_v42, %v176_v36  ;;  %v181_v44 = vmul.f32 %v285_v42, %v180_v37  ;;  %v185_v45 = vmul.f32 %v285_v42, %v184_v38 }
  0x56   :  { %v178_v49 = vadd.f32 %v177_v43, %v153_v39  ;;  %v182_v50 = vadd.f32 %v181_v44, %v157_v40  ;;  %v186_v51 = vadd.f32 %v185_v45, %v161_v41 }
  0x58   :  { %v189_v52 = vadd.f32 %v188_v46, %v178_v49  ;;  %v193_v53 = vadd.f32 %v192_v47, %v182_v50  ;;  %v198_v54 = vadd.f32 %v197_v48, %v186_v51 }
  0x5a   :  { %190 = vst [vmem:[#allocation7] sm:$0x1] %v189_v52  ;;  %195 = vst [vmem:[#allocation7 + $0x1] sm:$0x1] %v193_v53 }
  0x5b   :  { %200 = vst [vmem:[#allocation7 + $0x2] sm:$0x1] %v198_v54 }
  0x5c   :  { %325 = shalt.err (!%p322_p9)
}
  0x5d   :  { %212 = dma.vmem_to_hbm [thread:$0]  %s207_s29, 48, %s425_s2, [#allocation4], %s342_s15, %s342_s15, %s343_s16  }
  0x5e   :  { %338 = dma.done.wait [#allocation4], 48  }
  0x5f   :  { %339 = vsyncadd [#allocation4], 4294967248 }
  0x60   :  { %216 = vsyncpa [#allocation3], 1 }
  0x61   :  { %217 = vsyncpa [#allocation4], 1 }
  0x62   :  { %218 = vsyncpa [#allocation5], 1 }

</bundles_post_ra>
